<compile_context>
chip_gen: v5e
topology: v5e:2x2
jax: 0.10.0
libtpu: 0.0.40
codegen_flags: <defaults>
</compile_context>

<pallas_src>
import functools

import jax
import jax.numpy as jnp
from jax.experimental import pallas as pl
from jax.experimental.pallas import tpu as pltpu


# ---------------------------------------------------------------------------
# Kernels
# ---------------------------------------------------------------------------
def _sigmoid_min_max_kernel_static(x_ref, o_ref, *, minval, maxval, compute_dtype):
    x = x_ref[...].astype(compute_dtype)
    s = jax.nn.sigmoid(x)  # EUP transcendental
    scale = jnp.asarray(maxval - minval, compute_dtype)
    shift = jnp.asarray(minval, compute_dtype)
    o_ref[...] = (s * scale + shift).astype(o_ref.dtype)


def _sigmoid_min_max_kernel_dynamic(p_ref, x_ref, o_ref, *, compute_dtype):
    # p_ref lives in SMEM: p_ref[0] = minval, p_ref[1] = maxval (f32 scalars).
    minval = p_ref[0].astype(compute_dtype)
    maxval = p_ref[1].astype(compute_dtype)
    x = x_ref[...].astype(compute_dtype)
    s = jax.nn.sigmoid(x)
    o_ref[...] = (s * (maxval - minval) + minval).astype(o_ref.dtype)


# ---------------------------------------------------------------------------
# Wrapper
# ---------------------------------------------------------------------------
def _try_static_float(v):
    """Return float(v) if v is a concrete scalar, else None (traced value)."""
    if isinstance(v, (bool, int, float)):
        return float(v)
    try:
        return float(v)  # concrete numpy / JAX scalars
    except Exception:
        return None  # traced under jit/vmap -> pass via SMEM


def sigmoid_min_max(x, minval, maxval, *, target_block_bytes=4 * 1024 * 1024):
    """Elementwise sigmoid rescaled to [minval, maxval]. Works for any shape."""
    orig_shape = x.shape
    orig_dtype = x.dtype
    n = x.size
    if n == 0:
        return x
    itemsize = jnp.dtype(orig_dtype).itemsize

    # Sub-32-bit dtypes pack along sublanes: keep row tiles dense per dtype.
    sublane = {4: 8, 2: 16, 1: 32}.get(itemsize, 8)

    # bf16 stays bf16 (native bf16 VPU/EUP on v6e/v7x); everything else f32.
    if orig_dtype == jnp.bfloat16 or orig_dtype == jnp.float32:
        compute_dtype = orig_dtype
    else:
        compute_dtype = jnp.float32

    # ---- Lane-dense 2D view (no pad on the common path) ------------------
    lane = None
    for cand in (1024, 512, 256, 128):
        if n % cand == 0:
            lane = cand
            break

    pad_to = None
    if lane is None:
        # Rare fallback: n not a multiple of 128 -> minimal pad to 128 lanes.
        lane = 128
        pad_to = pl.cdiv(n, lane) * lane

    rows = (pad_to if pad_to is not None else n) // lane

    # ---- Block size: ~4 MiB per buffer ------------------------------------
    # 4 live buffers (double-buffered in + out) ~ 16 MiB, within the 32 MiB
    # scoped-VMEM limit requested below (safe on v5e/v6e/v7x).
    tile_rows = target_block_bytes // (lane * itemsize)
    tile_rows = max(sublane, (tile_rows // sublane) * sublane)
    if rows <= tile_rows:
        tile_rows = rows  # single full-array block (any row count is legal)
    grid = (pl.cdiv(rows, tile_rows),)  # partial tail block is masked by Pallas

    # ---- Reshape (free bitcast) / pad (fallback only) ----------------------
    x_flat = x.reshape(-1)
    if pad_to is not None:
        x_flat = jnp.pad(x_flat, (0, pad_to - n))
    x2d = x_flat.reshape(rows, lane)

    n_proc = rows * lane
    cost = pl.CostEstimate(
        flops=4 * n_proc,
        transcendentals=n_proc,
        bytes_accessed=2 * n_proc * itemsize,
    )

    block_spec = pl.BlockSpec((tile_rows, lane), lambda i: (i, 0))

    min_static = _try_static_float(minval)
    max_static = _try_static_float(maxval)

    if min_static is not None and max_static is not None:
        kernel = functools.partial(
            _sigmoid_min_max_kernel_static,
            minval=min_static,
            maxval=max_static,
            compute_dtype=compute_dtype,
        )
        operands = (x2d,)
        in_specs = [block_spec]
    else:
        # Traced min/max: ship them through SMEM (never concretize).
        params = jnp.stack(
            [jnp.asarray(minval, jnp.float32), jnp.asarray(maxval, jnp.float32)]
        )
        kernel = functools.partial(
            _sigmoid_min_max_kernel_dynamic, compute_dtype=compute_dtype
        )
        operands = (params, x2d)
        in_specs = [
            pl.BlockSpec(memory_space=pltpu.MemorySpace.SMEM),
            block_spec,
        ]

    allow_input_fusion = None
    if pad_to is not None:
        # Let XLA fuse the pad/reshape producer into the kernel's input read
        # instead of materializing a padded HBM copy (fallback path only).
        allow_input_fusion = [False] * (len(operands) - 1) + [True]

    compiler_params = pltpu.CompilerParams(
        # "parallel": lets Mosaic shard the row axis across TensorCores where
        # available; no-op on single-TC v5e/v6e.
        dimension_semantics=("parallel",),
        vmem_limit_bytes=32 * 1024 * 1024,
        allow_input_fusion=allow_input_fusion,
    )

    out2d = pl.pallas_call(
        kernel,
        out_shape=jax.ShapeDtypeStruct((rows, lane), orig_dtype),
        grid=grid,
        in_specs=in_specs,
        out_specs=block_spec,
        compiler_params=compiler_params,
        cost_estimate=cost,
    )(*operands)

    if pad_to is not None:
        return out2d.reshape(-1)[:n].reshape(orig_shape)
    return out2d.reshape(orig_shape)


if __name__ == "__main__":
    key = jax.random.PRNGKey(0)
    # NCHW input, consistent with the PyTorch module usage.
    x = jax.random.normal(key, (2, 4, 16, 16), dtype=jnp.float32)

    minval, maxval = -1.0, 2.0

    out = sigmoid_min_max(x, minval, maxval)
    out = jax.block_until_ready(out)

    # Reference check (plain JAX).
    ref = jax.nn.sigmoid(x) * (maxval - minval) + minval
    assert out.shape == x.shape
    assert out.dtype == x.dtype
    assert jnp.allclose(out, ref, atol=1e-5, rtol=1e-5)

    print("KERNEL_OK")
</pallas_src>

<mosaic_0001>
module attributes {stable_mosaic.version = 11 : i64} {
  func.func @_sigmoid_min_max_kernel_static(%arg0: i32, %arg1: memref<2x1024xf32, #tpu.memory_space<vmem>>, %arg2: memref<2x1024xf32, #tpu.memory_space<vmem>>) attributes {dimension_semantics = [#tpu.dimension_semantics<parallel>], iteration_bounds = array<i64: 1>, scalar_prefetch = 0 : i64, scratch_operands = 0 : i64, tpu.core_type = #tpu.core_type<tc>, window_params = [{transform_indices = @transform_0, window_bounds = array<i64: 2, 1024>}, {transform_indices = @transform_1, window_bounds = array<i64: 2, 1024>}]} {
    %c0 = arith.constant 0 : index
    %c0_0 = arith.constant 0 : index
    %0 = vector.load %arg1[%c0, %c0_0] : memref<2x1024xf32, #tpu.memory_space<vmem>>, vector<2x1024xf32>
    %1 = arith.negf %0 : vector<2x1024xf32>
    %2 = math.exp %1 : vector<2x1024xf32>
    %cst = arith.constant 1.000000e+00 : f32
    %3 = vector.broadcast %cst : f32 to vector<2x1024xf32>
    %4 = arith.addf %3, %2 : vector<2x1024xf32>
    %5 = arith.divf %3, %4 : vector<2x1024xf32>
    %cst_1 = arith.constant 3.000000e+00 : f32
    %6 = vector.broadcast %cst_1 : f32 to vector<2x1024xf32>
    %7 = arith.mulf %5, %6 : vector<2x1024xf32>
    %cst_2 = arith.constant -1.000000e+00 : f32
    %8 = vector.broadcast %cst_2 : f32 to vector<2x1024xf32>
    %9 = arith.addf %7, %8 : vector<2x1024xf32>
    %c0_3 = arith.constant 0 : index
    %c0_4 = arith.constant 0 : index
    %10 = vector.load %arg2[%c0_3, %c0_4] : memref<2x1024xf32, #tpu.memory_space<vmem>>, vector<2x1024xf32>
    tpu.vector_store %arg2[%c0_3, %c0_4], %9 {strides = array<i32>} : memref<2x1024xf32, #tpu.memory_space<vmem>>, vector<2x1024xf32>,
    return
  }
  func.func @transform_0(%arg0: i32) -> (i32, i32) {
    %c0_i32 = arith.constant 0 : i32
    %c0_i32_0 = arith.constant 0 : i32
    return %arg0, %c0_i32 : i32, i32
  }
  func.func @transform_1(%arg0: i32) -> (i32, i32) {
    %c0_i32 = arith.constant 0 : i32
    %c0_i32_0 = arith.constant 0 : i32
    return %arg0, %c0_i32 : i32, i32
  }
}

</mosaic_0001>

<bundles_post_ra>
// kernel: tpu_custom_call.1
= control target key start
LH: loop header
LB: loop body
LE: loop exit
PB: predicated region body
PF: predicated region fallthrough
CT: control target
= control target key end

     0   :  { %6 = vsyncpa [#allocation3], 0  ;;  %s168_s0 = inlined_call_operand.hbm [shape: f32[2,1024], index: 0, kind: input, shape index: {}]   ;;  %s169_s1 = inlined_call_operand.hbm [shape: f32[2,1024], index: 1, kind: output, shape index: {}]  }
   0x1   :  { %7 = vsyncpa [#allocation4], 0  ;;  %s13_s8 = sshll.u32 %s168_s0, 4  ;;  %s150_s9 = smov [#allocation2]   ;;  %s14_s8 = int_to_ptr.hbm [resolvable:$true] %s13_s8 }
   0x2   :  { %s15_s10 = sshll.u32 %s150_s9, 4  ;;  %s16_s10 = int_to_ptr.vmem [resolvable:$true] %s15_s10 }
   0x3   :  { %18 = dma.hbm_to_vmem [thread:$0]  %s14_s8, 256, %s16_s10, [#allocation3]  }
   0x4   :  { %146 = dma.done.wait [#allocation3], 256  }
   0x5   :  { %147 = vsyncadd [#allocation3], 4294967040  ;;  %v23_v0 = vld [vmem:[#allocation2] sm:$0xff]  ;;  %v24_v1 = vld [vmem:[#allocation2 + $0x8] sm:$0xff]  ;;  %s151_s0 = smov [#allocation5]   ;;  %s76_s14 = sshll.u32 %s169_s1, 4  ;;  %s77_s14 = int_to_ptr.hbm [resolvable:$true] %s76_s14 }
   0x6   :  { %v86_v2 = vmul.f32 -1.442695, %v23_v0  ;;  %v87_v3 = vmul.f32 -1.442695, %v24_v1  ;;  %s74_s11 = sshll.u32 %s151_s0, 4  ;;  %s75_s11 = int_to_ptr.vmem [resolvable:$true] %s74_s11 }
   0x8   :  { %90 = vpow2.f32 %v86_v2 }
   0x9   :  { %92 = vpow2.f32 %v87_v3 }
   0xe   :  { %v91_v4 = vpop.eup %90 }
   0xf   :  { %v93_v5 = vpop.eup %92  ;;  %v31_v6 = vadd.f32 1.0, %v91_v4 }
  0x10   :  { %v32_v7 = vadd.f32 1.0, %v93_v5 }
  0x11   :  { %94 = vrcp.f32 %v31_v6  ;;  %vm38_vm0 = vweird.f32 %v31_v6  ;;  %v44_v11 = vand.u32 2147483648, %v31_v6  ;;  %v42_v14 = vand.u32 2147483647, %v31_v6 }
  0x12   :  { %96 = vrcp.f32 %v32_v7  ;;  %v59_v15 = vand.u32 2147483648, %v32_v7  ;;  %vm53_vm2 = vweird.f32 %v32_v7  ;;  %v57_v17 = vand.u32 2147483647, %v32_v7 }
  0x13   :  { %v45_v19 = vor.u32 1.1754944e-38, %v44_v11  ;;  %vm43_vm5 = vcmp.eq.f32.partialorder %v42_v14, 8.507059e+37 }
  0x14   :  { %v60_v22 = vor.u32 1.1754944e-38, %v59_v15  ;;  %vm58_vm7 = vcmp.eq.f32.partialorder %v57_v17, 8.507059e+37 }
  0x17   :  { %v95_v8 = vpop.eup %94 }
  0x18   :  { %v97_v9 = vpop.eup %96  ;;  %v34_v10 = vmul.f32 %v95_v8, %v31_v6  ;;  %vm39_vm1 = vweird.f32 %v95_v8 }
  0x19   :  { %v49_v12 = vmul.f32 %v97_v9, %v32_v7  ;;  %vm54_vm3 = vweird.f32 %v97_v9  ;;  %vm40_vm4 = vmor %vm38_vm0, %vm39_vm1 }
  0x1a   :  { %v35_v13 = vsub.f32 1.0, %v34_v10  ;;  %vm55_vm6 = vmor %vm53_vm2, %vm54_vm3 }
  0x1b   :  { %v50_v16 = vsub.f32 1.0, %v49_v12 }
  0x1c   :  { %v36_v18 = vmul.f32 %v95_v8, %v35_v13 }
  0x1d   :  { %v51_v20 = vmul.f32 %v97_v9, %v50_v16 }
  0x1e   :  { %v37_v21 = vadd.f32 %v95_v8, %v36_v18 }
  0x1f   :  { %v52_v23 = vadd.f32 %v97_v9, %v51_v20 }
  0x20   :  { %v41_v24 = vsel %vm40_vm4, %v95_v8, %v37_v21 }
  0x21   :  { %v46_v25 = vsel %vm43_vm5, %v45_v19, %v41_v24  ;;  %v56_v26 = vsel %vm55_vm6, %v97_v9, %v52_v23 }
  0x22   :  { %v63_v27 = vmul.f32 3.0, %v46_v25  ;;  %v61_v28 = vsel %vm58_vm7, %v60_v22, %v56_v26 }
  0x23   :  { %v64_v29 = vmul.f32 3.0, %v61_v28 }
  0x24   :  { %v65_v30 = vadd.f32 -1.0, %v63_v27 }
  0x25   :  { %v66_v31 = vadd.f32 -1.0, %v64_v29 }
  0x26   :  { %67 = vst [vmem:[#allocation5] sm:$0xff] %v65_v30 }
  0x27   :  { %68 = vst [vmem:[#allocation5 + $0x8] sm:$0xff] %v66_v31 }
  0x28   :  { %79 = dma.vmem_to_hbm [thread:$0]  %s75_s11, 256, %s77_s14, [#allocation4]  }
  0x29   :  { %148 = dma.done.wait [#allocation4], 256  }
  0x2a   :  { %149 = vsyncadd [#allocation4], 4294967040 }
  0x2b   :  { %84 = vsyncpa [#allocation3], 1 }
  0x2c   :  { %85 = vsyncpa [#allocation4], 1 }

</bundles_post_ra>
